<compile_context>
chip_gen: v6e
topology: v6e:2x2x1
jax: 0.10.0
libtpu: 0.0.40
codegen_flags: <defaults>
</compile_context>

<pallas_src>
import numpy as np

import jax
import jax.numpy as jnp
from jax.experimental import pallas as pl
from jax.experimental.pallas import tpu as pltpu


def _round_up(a, m):
    return ((a + m - 1) // m) * m


def node_model_kernel(sblk_ref, nblk_ref,                 # SMEM scalar prefetch
                      x_ref, src_ref, ea_ref,             # tiled inputs
                      w1x_ref, w1a_ref, b1_ref, w2_ref, b2_ref,
                      o_ref,                              # output
                      acc_ref):                           # VMEM scratch
    n = pl.program_id(0)
    e = pl.program_id(1)
    tN = x_ref.shape[0]
    Fe = ea_ref.shape[1] - 1          # last column of ea_ref is the ones column

    # ---- init accumulator at the start of this tile's edge reduction -------
    @pl.when(e == 0)
    def _():
        acc_ref[...] = jnp.zeros_like(acc_ref)

    # ---- per-block one-hot scatter-sum on the MXU ---------------------------
    # Only the e-steps that actually carry edges for this node tile do work;
    # the index_map clamps the edge-block index for the remaining steps so
    # their DMA is deduplicated and the compute is skipped here.
    @pl.when(e < nblk_ref[n])
    def _():
        # (tN, 1) iota; the == against the (1, tE) src block broadcasts.
        row_ids = n * tN + jax.lax.broadcasted_iota(jnp.int32, (tN, 1), 0)
        onehot = (row_ids == src_ref[...]).astype(jnp.float32)        # (tN, tE)
        # ea_ref = [edge_attr | 1]: one matmul accumulates feature sums and counts.
        acc_ref[...] += jnp.dot(onehot, ea_ref[...],
                                preferred_element_type=jnp.float32)    # (tN, Fe+1)

    # ---- finalize: mean, split-weight MLP, lane-dense store -----------------
    @pl.when(e == pl.num_programs(1) - 1)
    def _():
        acc = acc_ref[...]
        sums = acc[:, :Fe]                                             # (tN, Fe)
        counts = acc[:, Fe:]                                           # (tN, 1)
        # exact reciprocal (approx=True would risk the 1e-5 tolerance)
        agg = sums * pl.reciprocal(jnp.maximum(counts, 1.0), approx=False)

        # concat-free first layer: [x | agg] @ w1 == x @ w1x + agg @ w1a
        h = (jnp.dot(x_ref[...].astype(jnp.float32), w1x_ref[...],
                     preferred_element_type=jnp.float32)
             + jnp.dot(agg, w1a_ref[...], preferred_element_type=jnp.float32)
             + b1_ref[...])
        h = jnp.maximum(h, 0.0)

        out = jnp.dot(h, w2_ref[...], preferred_element_type=jnp.float32) + b2_ref[...]
        o_ref[...] = out.astype(o_ref.dtype)


def node_model_forward(x, edge_index, edge_attr, params, *, tile_n=None, tile_e=None):
    """x: (N, Fx) f32, edge_index: (2, E) int32, edge_attr: (E, Fe) f32."""
    w1, b1, w2, b2 = params
    w1 = jnp.asarray(w1, jnp.float32)
    w2 = jnp.asarray(w2, jnp.float32)
    N, Fx = x.shape
    E, Fe = edge_attr.shape
    H = w1.shape[1]
    node_out_dim = w2.shape[1]

    # ---- tile sizes ---------------------------------------------------------
    tE = int(tile_e) if tile_e is not None else 512
    tE = max(128, _round_up(tE, 128))
    tE = min(tE, _round_up(max(E, 1), 128))          # don't exceed padded E

    n_pad8 = _round_up(max(N, 1), 8)
    tN = int(tile_n) if tile_n is not None else min(256, n_pad8)
    tN = max(8, _round_up(tN, 8))
    if tile_n is None and n_pad8 // tN < 2 and n_pad8 >= 16:
        # v7x has 2 TensorCores: keep >= 2 blocks on the "parallel" node axis.
        tN = max(8, _round_up(n_pad8 // 2, 8))
    N_pad = _round_up(max(N, 1), tN)
    E_pad = _round_up(max(E, 1), tE)
    n_tiles = N_pad // tN
    n_eblocks = E_pad // tE

    # ---- host-side segment preprocessing (concrete inputs) ------------------
    src_np = np.asarray(jax.device_get(edge_index))[0].astype(np.int64)
    ea_np = np.asarray(jax.device_get(edge_attr), dtype=np.float32)
    order = np.argsort(src_np, kind="stable")
    src_sorted = src_np[order]
    ea_sorted = ea_np[order]

    bounds = np.arange(n_tiles + 1, dtype=np.int64) * tN
    starts = np.searchsorted(src_sorted, bounds[:-1], side="left")
    ends = np.searchsorted(src_sorted, bounds[1:], side="left")
    nblk = np.where(ends > starts,
                    (ends - 1) // tE - starts // tE + 1, 0).astype(np.int32)
    sblk = np.where(nblk > 0, starts // tE, 0).astype(np.int32)
    max_steps = int(max(int(nblk.max()) if nblk.size else 0, 1))

    # ---- padded / augmented operands ----------------------------------------
    x_p = np.zeros((N_pad, Fx), np.float32)
    x_p[:N] = np.asarray(jax.device_get(x), np.float32)

    ea_aug = np.zeros((E_pad, Fe + 1), np.float32)     # [edge_attr | 1], sorted
    ea_aug[:E, :Fe] = ea_sorted
    ea_aug[:E, Fe] = 1.0

    src_pad = np.full((1, E_pad), N_pad, np.int32)     # sentinel: never matches
    src_pad[0, :E] = src_sorted.astype(np.int32)

    # Split w1 so the kernel never concatenates along the lane axis.
    w1x = w1[:Fx, :]
    w1a = w1[Fx:, :]
    b1_2d = jnp.asarray(b1, jnp.float32).reshape(1, H)

    # Lane-dense output slab: pad the output feature dim to a multiple of 128.
    OP = _round_up(max(node_out_dim, 1), 128)
    w2_p = jnp.zeros((H, OP), jnp.float32).at[:, :node_out_dim].set(w2)
    b2_p = jnp.zeros((1, OP), jnp.float32).at[:, :node_out_dim].set(
        jnp.asarray(b2, jnp.float32).reshape(1, node_out_dim))

    # ---- grid / specs --------------------------------------------------------
    def x_map(n, e, sb, nb):
        return (n, 0)

    def src_map(n, e, sb, nb):
        step = jnp.minimum(e, jnp.maximum(nb[n] - 1, 0))
        return (0, sb[n] + step)

    def ea_map(n, e, sb, nb):
        step = jnp.minimum(e, jnp.maximum(nb[n] - 1, 0))
        return (sb[n] + step, 0)

    def const_map(n, e, sb, nb):
        return (0, 0)

    def out_map(n, e, sb, nb):
        return (n, 0)

    # Generation-aware VMEM limit (v7x: 64 MiB physical; v5e/v6e: 128 MiB).
    try:
        cap = int(getattr(pltpu.get_tpu_info(), "vmem_capacity_bytes"))
    except Exception:
        cap = 64 * 1024 * 1024
    vmem_limit = min(96 * 1024 * 1024, max(16 * 1024 * 1024, (cap * 6) // 10))

    scatter_flops = 2 * n_tiles * max_steps * tN * tE * (Fe + 1)
    mlp_flops = 2 * N_pad * ((Fx + Fe) * H + H * OP)
    bytes_accessed = 4 * (N_pad * Fx + E_pad * (Fe + 2) + (Fx + Fe) * H
                          + H + H * OP + OP + N_pad * OP)
    cost = pl.CostEstimate(flops=int(scatter_flops + mlp_flops),
                           transcendentals=0,
                           bytes_accessed=int(bytes_accessed))

    out_padded = pl.pallas_call(
        node_model_kernel,
        out_shape=jax.ShapeDtypeStruct((N_pad, OP), jnp.float32),
        grid_spec=pltpu.PrefetchScalarGridSpec(
            num_scalar_prefetch=2,
            grid=(n_tiles, max_steps),
            in_specs=[
                pl.BlockSpec((tN, Fx), x_map),            # x
                pl.BlockSpec((1, tE), src_map),           # sorted src ids
                pl.BlockSpec((tE, Fe + 1), ea_map),       # sorted edge_attr | 1
                pl.BlockSpec((Fx, H), const_map),         # w1x
                pl.BlockSpec((Fe, H), const_map),         # w1a
                pl.BlockSpec((1, H), const_map),          # b1
                pl.BlockSpec((H, OP), const_map),         # w2 (padded)
                pl.BlockSpec((1, OP), const_map),         # b2 (padded)
            ],
            out_specs=pl.BlockSpec((tN, OP), out_map),
            scratch_shapes=[pltpu.VMEM((tN, Fe + 1), jnp.float32)],
        ),
        compiler_params=pltpu.CompilerParams(
            dimension_semantics=("parallel", "arbitrary"),
            vmem_limit_bytes=int(vmem_limit),
        ),
        cost_estimate=cost,
    )(
        jnp.asarray(sblk), jnp.asarray(nblk),
        jnp.asarray(x_p), jnp.asarray(src_pad), jnp.asarray(ea_aug),
        w1x, w1a, b1_2d, w2_p, b2_p,
    )

    return out_padded[:N, :node_out_dim]


def init_params(key, node_in_dim, edge_out_dim, node_out_dim, hidden_dim):
    d_in = node_in_dim + edge_out_dim
    k1, k2, k3, k4 = jax.random.split(key, 4)
    w1 = jax.random.uniform(k1, (d_in, hidden_dim), jnp.float32,
                            -1.0 / d_in ** 0.5, 1.0 / d_in ** 0.5)
    b1 = jax.random.uniform(k2, (1, hidden_dim), jnp.float32,
                            -1.0 / d_in ** 0.5, 1.0 / d_in ** 0.5)
    w2 = jax.random.uniform(k3, (hidden_dim, node_out_dim), jnp.float32,
                            -1.0 / hidden_dim ** 0.5, 1.0 / hidden_dim ** 0.5)
    b2 = jax.random.uniform(k4, (1, node_out_dim), jnp.float32,
                            -1.0 / hidden_dim ** 0.5, 1.0 / hidden_dim ** 0.5)
    return w1, b1, w2, b2


def node_model_reference(x, edge_index, edge_attr, params):
    """Pure-JAX reference for validation."""
    w1, b1, w2, b2 = params
    N = x.shape[0]
    src = edge_index[0]
    sums = jnp.zeros((N, edge_attr.shape[1]), jnp.float32).at[src].add(edge_attr)
    counts = jnp.zeros((N,), jnp.float32).at[src].add(1.0)
    agg = sums / jnp.maximum(counts, 1.0)[:, None]
    combined = jnp.concatenate([x, agg], axis=1)
    h = jnp.maximum(combined @ w1 + b1, 0.0)
    return h @ w2 + b2


if __name__ == "__main__":
    key = jax.random.PRNGKey(0)
    N, E = 16, 32
    node_in_dim, edge_out_dim, node_out_dim, hidden_dim = 8, 8, 4, 32

    kx, ke, kidx, kp = jax.random.split(key, 4)
    x = jax.random.normal(kx, (N, node_in_dim), jnp.float32)
    edge_attr = jax.random.normal(ke, (E, edge_out_dim), jnp.float32)
    edge_index = jax.random.randint(kidx, (2, E), 0, N, jnp.int32)
    u = None       # unused by NodeModel.forward
    batch = None   # unused by NodeModel.forward

    params = init_params(kp, node_in_dim, edge_out_dim, node_out_dim, hidden_dim)

    out = node_model_forward(x, edge_index, edge_attr, params)
    out = jax.block_until_ready(out)

    ref = node_model_reference(x, edge_index, edge_attr, params)
    assert out.shape == (N, node_out_dim)
    assert jnp.allclose(out, ref, atol=1e-5, rtol=1e-5)

    print("KERNEL_OK")
</pallas_src>

<mosaic_0001>
module attributes {stable_mosaic.version = 11 : i64} {
  func.func @node_model_kernel(%arg0: i32, %arg1: i32, %arg2: memref<2xi32, #tpu.memory_space<smem>>, %arg3: memref<2xi32, #tpu.memory_space<smem>>, %arg4: memref<8x8xf32, #tpu.memory_space<vmem>>, %arg5: memref<1x128xi32, #tpu.memory_space<vmem>>, %arg6: memref<128x9xf32, #tpu.memory_space<vmem>>, %arg7: memref<8x32xf32, #tpu.memory_space<vmem>>, %arg8: memref<8x32xf32, #tpu.memory_space<vmem>>, %arg9: memref<1x32xf32, #tpu.memory_space<vmem>>, %arg10: memref<32x128xf32, #tpu.memory_space<vmem>>, %arg11: memref<1x128xf32, #tpu.memory_space<vmem>>, %arg12: memref<8x128xf32, #tpu.memory_space<vmem>>, %arg13: memref<8x9xf32, #tpu.memory_space<vmem>>) attributes {dimension_semantics = [#tpu.dimension_semantics<parallel>, #tpu.dimension_semantics<arbitrary>], iteration_bounds = array<i64: 2, 1>, scalar_prefetch = 2 : i64, scratch_operands = 1 : i64, tpu.core_type = #tpu.core_type<tc>, window_params = [{transform_indices = @transform_0, window_bounds = array<i64: 8, 8>}, {transform_indices = @transform_1, window_bounds = array<i64: 1, 128>}, {transform_indices = @transform_2, window_bounds = array<i64: 128, 9>}, {pipeline_mode = #tpu.pipeline_mode<synchronous>, transform_indices = @transform_3, window_bounds = array<i64: 8, 32>}, {pipeline_mode = #tpu.pipeline_mode<synchronous>, transform_indices = @transform_4, window_bounds = array<i64: 8, 32>}, {pipeline_mode = #tpu.pipeline_mode<synchronous>, transform_indices = @transform_5, window_bounds = array<i64: 1, 32>}, {pipeline_mode = #tpu.pipeline_mode<synchronous>, transform_indices = @transform_6, window_bounds = array<i64: 32, 128>}, {pipeline_mode = #tpu.pipeline_mode<synchronous>, transform_indices = @transform_7, window_bounds = array<i64: 1, 128>}, {transform_indices = @transform_8, window_bounds = array<i64: 8, 128>}]} {
    %c0_i32 = arith.constant 0 : i32
    %0 = arith.cmpi eq, %arg1, %c0_i32 : i32
    %1 = arith.extui %0 : i1 to i32
    %c0_i32_0 = arith.constant 0 : i32
    %2 = arith.cmpi ne, %1, %c0_i32_0 : i32
    scf.if %2 {
      %cst = arith.constant 0.000000e+00 : f32
      %11 = vector.broadcast %cst : f32 to vector<8x9xf32>
      %c0 = arith.constant 0 : index
      %c0_4 = arith.constant 0 : index
      %12 = vector.load %arg13[%c0, %c0_4] : memref<8x9xf32, #tpu.memory_space<vmem>>, vector<8x9xf32>
      tpu.vector_store %arg13[%c0, %c0_4], %11 {strides = array<i32>} : memref<8x9xf32, #tpu.memory_space<vmem>>, vector<8x9xf32>,
    } else {
    }
    %3 = arith.index_cast %arg0 : i32 to index
    %4 = memref.load %arg3[%3] : memref<2xi32, #tpu.memory_space<smem>>
    %5 = arith.cmpi slt, %arg1, %4 : i32
    %6 = arith.extui %5 : i1 to i32
    %c0_i32_1 = arith.constant 0 : i32
    %7 = arith.cmpi ne, %6, %c0_i32_1 : i32
    scf.if %7 {
      %c8_i32 = arith.constant 8 : i32
      %11 = arith.muli %arg0, %c8_i32 : i32
      %12 = tpu.iota {dimensions = array<i32: 0>} : vector<8x1xi32>
      %13 = vector.broadcast %11 : i32 to vector<8x1xi32>
      %14 = arith.addi %13, %12 : vector<8x1xi32>
      %c0 = arith.constant 0 : index
      %c0_4 = arith.constant 0 : index
      %15 = vector.load %arg5[%c0, %c0_4] : memref<1x128xi32, #tpu.memory_space<vmem>>, vector<1x128xi32>
      %16 = vector.broadcast %14 : vector<8x1xi32> to vector<8x128xi32>
      %17 = vector.broadcast %15 : vector<1x128xi32> to vector<8x128xi32>
      %18 = arith.cmpi eq, %16, %17 : vector<8x128xi32>
      %19 = arith.extui %18 : vector<8x128xi1> to vector<8x128xi32>
      %20 = arith.sitofp %19 : vector<8x128xi32> to vector<8x128xf32>
      %c0_5 = arith.constant 0 : index
      %c0_6 = arith.constant 0 : index
      %21 = vector.load %arg13[%c0_5, %c0_6] : memref<8x9xf32, #tpu.memory_space<vmem>>, vector<8x9xf32>
      %c0_7 = arith.constant 0 : index
      %c0_8 = arith.constant 0 : index
      %22 = vector.load %arg6[%c0_7, %c0_8] : memref<128x9xf32, #tpu.memory_space<vmem>>, vector<128x9xf32>
      %cst = arith.constant dense<0.000000e+00> : vector<8x9xf32>
      %23 = tpu.matmul %20, %22, %cst {dimension_numbers = #tpu.dot_dimension_numbers<[1], [0], [0], [1], [0, 0, 1, 1], [], []>} : vector<8x128xf32>, vector<128x9xf32>, vector<8x9xf32> -> vector<8x9xf32>
      %24 = arith.addf %21, %23 : vector<8x9xf32>
      %c0_9 = arith.constant 0 : index
      %c0_10 = arith.constant 0 : index
      %25 = vector.load %arg13[%c0_9, %c0_10] : memref<8x9xf32, #tpu.memory_space<vmem>>, vector<8x9xf32>
      tpu.vector_store %arg13[%c0_9, %c0_10], %24 {strides = array<i32>} : memref<8x9xf32, #tpu.memory_space<vmem>>, vector<8x9xf32>,
    } else {
    }
    %c0_i32_2 = arith.constant 0 : i32
    %8 = arith.cmpi eq, %arg1, %c0_i32_2 : i32
    %9 = arith.extui %8 : i1 to i32
    %c0_i32_3 = arith.constant 0 : i32
    %10 = arith.cmpi ne, %9, %c0_i32_3 : i32
    scf.if %10 {
      %c0 = arith.constant 0 : index
      %c0_4 = arith.constant 0 : index
      %11 = vector.load %arg13[%c0, %c0_4] : memref<8x9xf32, #tpu.memory_space<vmem>>, vector<8x9xf32>
      %12 = vector.extract_strided_slice %11 {offsets = [0, 0], sizes = [8, 8], strides = [1, 1]} : vector<8x9xf32> to vector<8x8xf32>
      %13 = vector.extract_strided_slice %11 {offsets = [0, 8], sizes = [8, 1], strides = [1, 1]} : vector<8x9xf32> to vector<8x1xf32>
      %cst = arith.constant 1.000000e+00 : f32
      %14 = vector.broadcast %cst : f32 to vector<8x1xf32>
      %15 = arith.maximumf %13, %14 : vector<8x1xf32>
      %16 = tpu.reciprocal %15 : vector<8x1xf32> -> vector<8x1xf32>
      %17 = vector.broadcast %16 : vector<8x1xf32> to vector<8x8xf32>
      %18 = arith.mulf %12, %17 : vector<8x8xf32>
      %c0_5 = arith.constant 0 : index
      %c0_6 = arith.constant 0 : index
      %19 = vector.load %arg4[%c0_5, %c0_6] : memref<8x8xf32, #tpu.memory_space<vmem>>, vector<8x8xf32>
      %c0_7 = arith.constant 0 : index
      %c0_8 = arith.constant 0 : index
      %20 = vector.load %arg7[%c0_7, %c0_8] : memref<8x32xf32, #tpu.memory_space<vmem>>, vector<8x32xf32>
      %cst_9 = arith.constant dense<0.000000e+00> : vector<8x32xf32>
      %21 = tpu.matmul %19, %20, %cst_9 {dimension_numbers = #tpu.dot_dimension_numbers<[1], [0], [0], [1], [0, 0, 1, 1], [], []>} : vector<8x8xf32>, vector<8x32xf32>, vector<8x32xf32> -> vector<8x32xf32>
      %c0_10 = arith.constant 0 : index
      %c0_11 = arith.constant 0 : index
      %22 = vector.load %arg8[%c0_10, %c0_11] : memref<8x32xf32, #tpu.memory_space<vmem>>, vector<8x32xf32>
      %cst_12 = arith.constant dense<0.000000e+00> : vector<8x32xf32>
      %23 = tpu.matmul %18, %22, %cst_12 {dimension_numbers = #tpu.dot_dimension_numbers<[1], [0], [0], [1], [0, 0, 1, 1], [], []>} : vector<8x8xf32>, vector<8x32xf32>, vector<8x32xf32> -> vector<8x32xf32>
      %24 = arith.addf %21, %23 : vector<8x32xf32>
      %c0_13 = arith.constant 0 : index
      %c0_14 = arith.constant 0 : index
      %25 = vector.load %arg9[%c0_13, %c0_14] : memref<1x32xf32, #tpu.memory_space<vmem>>, vector<1x32xf32>
      %26 = vector.broadcast %25 : vector<1x32xf32> to vector<8x32xf32>
      %27 = arith.addf %24, %26 : vector<8x32xf32>
      %cst_15 = arith.constant 0.000000e+00 : f32
      %28 = vector.broadcast %cst_15 : f32 to vector<8x32xf32>
      %29 = arith.maximumf %27, %28 : vector<8x32xf32>
      %c0_16 = arith.constant 0 : index
      %c0_17 = arith.constant 0 : index
      %30 = vector.load %arg10[%c0_16, %c0_17] : memref<32x128xf32, #tpu.memory_space<vmem>>, vector<32x128xf32>
      %cst_18 = arith.constant dense<0.000000e+00> : vector<8x128xf32>
      %31 = tpu.matmul %29, %30, %cst_18 {dimension_numbers = #tpu.dot_dimension_numbers<[1], [0], [0], [1], [0, 0, 1, 1], [], []>} : vector<8x32xf32>, vector<32x128xf32>, vector<8x128xf32> -> vector<8x128xf32>
      %c0_19 = arith.constant 0 : index
      %c0_20 = arith.constant 0 : index
      %32 = vector.load %arg11[%c0_19, %c0_20] : memref<1x128xf32, #tpu.memory_space<vmem>>, vector<1x128xf32>
      %33 = vector.broadcast %32 : vector<1x128xf32> to vector<8x128xf32>
      %34 = arith.addf %31, %33 : vector<8x128xf32>
      %c0_21 = arith.constant 0 : index
      %c0_22 = arith.constant 0 : index
      %35 = vector.load %arg12[%c0_21, %c0_22] : memref<8x128xf32, #tpu.memory_space<vmem>>, vector<8x128xf32>
      tpu.vector_store %arg12[%c0_21, %c0_22], %34 {strides = array<i32>} : memref<8x128xf32, #tpu.memory_space<vmem>>, vector<8x128xf32>,
    } else {
    }
    return
  }
  func.func @transform_0(%arg0: i32, %arg1: i32, %arg2: memref<2xi32, #tpu.memory_space<smem>>, %arg3: memref<2xi32, #tpu.memory_space<smem>>) -> (i32, i32) {
    %c0_i32 = arith.constant 0 : i32
    %c0_i32_0 = arith.constant 0 : i32
    return %arg0, %c0_i32 : i32, i32
  }
  func.func @transform_1(%arg0: i32, %arg1: i32, %arg2: memref<2xi32, #tpu.memory_space<smem>>, %arg3: memref<2xi32, #tpu.memory_space<smem>>) -> (i32, i32) {
    %0 = arith.index_cast %arg0 : i32 to index
    %1 = memref.load %arg3[%0] : memref<2xi32, #tpu.memory_space<smem>>
    %c1_i32 = arith.constant 1 : i32
    %2 = arith.subi %1, %c1_i32 : i32
    %c0_i32 = arith.constant 0 : i32
    %3 = arith.maxsi %2, %c0_i32 : i32
    %4 = arith.minsi %arg1, %3 : i32
    %5 = arith.index_cast %arg0 : i32 to index
    %6 = memref.load %arg2[%5] : memref<2xi32, #tpu.memory_space<smem>>
    %7 = arith.addi %6, %4 : i32
    %c0_i32_0 = arith.constant 0 : i32
    %c0_i32_1 = arith.constant 0 : i32
    return %c0_i32_0, %7 : i32, i32
  }
  func.func @transform_2(%arg0: i32, %arg1: i32, %arg2: memref<2xi32, #tpu.memory_space<smem>>, %arg3: memref<2xi32, #tpu.memory_space<smem>>) -> (i32, i32) {
    %0 = arith.index_cast %arg0 : i32 to index
    %1 = memref.load %arg3[%0] : memref<2xi32, #tpu.memory_space<smem>>
    %c1_i32 = arith.constant 1 : i32
    %2 = arith.subi %1, %c1_i32 : i32
    %c0_i32 = arith.constant 0 : i32
    %3 = arith.maxsi %2, %c0_i32 : i32
    %4 = arith.minsi %arg1, %3 : i32
    %5 = arith.index_cast %arg0 : i32 to index
    %6 = memref.load %arg2[%5] : memref<2xi32, #tpu.memory_space<smem>>
    %7 = arith.addi %6, %4 : i32
    %c0_i32_0 = arith.constant 0 : i32
    %c0_i32_1 = arith.constant 0 : i32
    return %7, %c0_i32_0 : i32, i32
  }
  func.func @transform_3(%arg0: i32, %arg1: i32, %arg2: memref<2xi32, #tpu.memory_space<smem>>, %arg3: memref<2xi32, #tpu.memory_space<smem>>) -> (i32, i32) {
    %c0_i32 = arith.constant 0 : i32
    %c0_i32_0 = arith.constant 0 : i32
    %c0_i32_1 = arith.constant 0 : i32
    return %c0_i32, %c0_i32_0 : i32, i32
  }
  func.func @transform_4(%arg0: i32, %arg1: i32, %arg2: memref<2xi32, #tpu.memory_space<smem>>, %arg3: memref<2xi32, #tpu.memory_space<smem>>) -> (i32, i32) {
    %c0_i32 = arith.constant 0 : i32
    %c0_i32_0 = arith.constant 0 : i32
    %c0_i32_1 = arith.constant 0 : i32
    return %c0_i32, %c0_i32_0 : i32, i32
  }
  func.func @transform_5(%arg0: i32, %arg1: i32, %arg2: memref<2xi32, #tpu.memory_space<smem>>, %arg3: memref<2xi32, #tpu.memory_space<smem>>) -> (i32, i32) {
    %c0_i32 = arith.constant 0 : i32
    %c0_i32_0 = arith.constant 0 : i32
    %c0_i32_1 = arith.constant 0 : i32
    return %c0_i32, %c0_i32_0 : i32, i32
  }
  func.func @transform_6(%arg0: i32, %arg1: i32, %arg2: memref<2xi32, #tpu.memory_space<smem>>, %arg3: memref<2xi32, #tpu.memory_space<smem>>) -> (i32, i32) {
    %c0_i32 = arith.constant 0 : i32
    %c0_i32_0 = arith.constant 0 : i32
    %c0_i32_1 = arith.constant 0 : i32
    return %c0_i32, %c0_i32_0 : i32, i32
  }
  func.func @transform_7(%arg0: i32, %arg1: i32, %arg2: memref<2xi32, #tpu.memory_space<smem>>, %arg3: memref<2xi32, #tpu.memory_space<smem>>) -> (i32, i32) {
    %c0_i32 = arith.constant 0 : i32
    %c0_i32_0 = arith.constant 0 : i32
    %c0_i32_1 = arith.constant 0 : i32
    return %c0_i32, %c0_i32_0 : i32, i32
  }
  func.func @transform_8(%arg0: i32, %arg1: i32, %arg2: memref<2xi32, #tpu.memory_space<smem>>, %arg3: memref<2xi32, #tpu.memory_space<smem>>) -> (i32, i32) {
    %c0_i32 = arith.constant 0 : i32
    %c0_i32_0 = arith.constant 0 : i32
    return %arg0, %c0_i32 : i32, i32
  }
}

</mosaic_0001>

<bundles_post_ra>
// kernel: tpu_custom_call.1
= control target key start
LH: loop header
LB: loop body
LE: loop exit
PB: predicated region body
PF: predicated region fallthrough
CT: control target
= control target key end

     0   :  { %s1515_s0 = inlined_call_operand.vmem [shape: s32[2], index: 0, kind: input, shape index: {}]   ;;  %s1516_s2 = inlined_call_operand.vmem [shape: f32[16,8], index: 2, kind: input, shape index: {}]   ;;  %s1517_s3 = inlined_call_operand.vmem [shape: s32[1,128], index: 3, kind: input, shape index: {}]   ;;  %s1518_s4 = inlined_call_operand.vmem [shape: f32[128,9], index: 4, kind: input, shape index: {}]   ;;  %s1519_s5 = inlined_call_operand.vmem [shape: f32[8,32], index: 5, kind: input, shape index: {}]   ;;  %s1520_s6 = inlined_call_operand.vmem [shape: f32[8,32], index: 6, kind: input, shape index: {}]   ;;  %s1521_s7 = inlined_call_operand.vmem [shape: f32[1,32], index: 7, kind: input, shape index: {}]   ;;  %s1522_s8 = inlined_call_operand.vmem [shape: f32[32,128], index: 8, kind: input, shape index: {}]   ;;  %s1523_s9 = inlined_call_operand.vmem [shape: f32[1,128], index: 9, kind: input, shape index: {}]   ;;  %s1524_s10 = inlined_call_operand.hbm [shape: f32[16,128], index: 10, kind: output, shape index: {}]   ;;  %s1525_s1 = inlined_call_operand.vmem [shape: s32[2], index: 1, kind: input, shape index: {}]  }
   0x1   :  { %1530 = sst [smem:[#allocation14_spill]] %s1516_s2  ;;  %s15_s15 = sshll.u32 %s1515_s0, 4  ;;  %s16_s15 = int_to_ptr.vmem [resolvable:$true] %s15_s15 }
   0x2   :  { %s19_s18 = sshll.u32 %s1525_s1, 4  ;;  %s1148_s19 = scalar_lea.vmem %s16_s15, 16  ;;  %s20_s18 = int_to_ptr.vmem [resolvable:$true] %s19_s18 }
   0x3   :  { %p1149_p0 = scmp.ne.s32.totalorder %s16_s15, %s1148_s19  ;;  %p1153_p1 = scmp.lt.s32.totalorder %s16_s15, %s16_s15 }
   0x4   :  { %p1154_p2 = scmp.lt.s32.totalorder %s1148_s19, %s1148_s19 }
   0x6   :  { %p1155_p3 = por %p1154_p2, %p1153_p1 }
   0x8   :  { %p1156_p4 = pnand %p1155_p3, %p1149_p0 }
   0xa   :  { %1159 = shalt.err (!%p1156_p4)  }
   0xb   :  { %s1252_s20 = smov [#allocation4]   ;;  %s1160_s21 = scalar_lea.vmem %s20_s18, 16 }
   0xc   :  { %18 = dma.vmem_to_smem %s16_s15, 16, %s1252_s20, [#allocation3] }
   0xd   :  { %p1161_p5 = scmp.ne.s32.totalorder %s20_s18, %s1160_s21  ;;  %p1165_p6 = scmp.lt.s32.totalorder %s20_s18, %s20_s18 }
   0xe   :  { %p1166_p7 = scmp.lt.s32.totalorder %s1160_s21, %s1160_s21 }
  0x10   :  { %p1167_p8 = por %p1166_p7, %p1165_p6 }
  0x12   :  { %p1168_p9 = pnand %p1167_p8, %p1161_p5 }
  0x14   :  { %1171 = shalt.err (!%p1168_p9)  }
  0x15   :  { %s1253_s0 = smov [#allocation5]  }
  0x16   :  { %22 = dma.vmem_to_smem %s20_s18, 16, %s1253_s0, [#allocation3] }
  0x17   :  { %1222 = dma.done.wait [#allocation3], 32 }
  0x18   :  { %1223 = vsyncadd [#allocation3], 4294967264 }
  0x19   :  { %24 = sfence }
  0x1a   :  { %25 = vsyncpa [#allocation7], 0 }
  0x1b   :  { %27 = vsyncpa [#allocation7 + $0x1], 0  ;;  %s1322_s1 = smov 0   ;;  %s1324_s22 = smov 0  }
  0x1c   :  { %s1326_s23 = smov 0   ;;  %s1328_s24 = smov 0  }
  0x1d   :  { %s1330_s25 = smov 0   ;;  %s1332_s26 = smov 0  }
  0x1e LB: > { %1531 = sst [smem:[#allocation10_spill]] %s1238_s23  ;;  %s946_s27 = sadd.s32 4294967295, %s1250_s26   ;;  %s1250_s26 = sphi %s1332_s26, %s33_s26   ;;  %s1246_s25 = sphi %s1330_s25, %s1542_s25   ;;  %s1242_s24 = sphi %s1328_s24, %s1541_s24   ;;  %s1238_s23 = sphi %s1326_s23, %s1540_s23   ;;  %s1234_s22 = sphi %s1324_s22, %s1544_s22   ;;  %s1230_s1 = sphi %s1322_s1, %s1543_s1  }
  0x1f   : > { %1532 = sst [smem:[#allocation11_spill]] %s1246_s25  ;;  %s947_s28 = sadd.s32 4294967294, %s1250_s26  }
  0x20   : > { %s45_s29 = sadd.s32 1, %s1246_s25  ;;  %s267_s30 = sadd.s32 1, %s1238_s23 }
  0x21   : > { %p47_p10 = scmp.ge.s32.totalorder %s45_s29, 2  ;;  %p277_p11 = scmp.ne.s32.totalorder %s1238_s23, %s1234_s22 }
  0x22   : > { %p278_p12 = scmp.eq.s32.totalorder %s946_s27, 1  ;;  %p283_p13 = scmp.ne.s32.totalorder %s1234_s22, %s1230_s1 }
  0x23   : > { %s1546_s29 = smov (%p47_p10, %s45_s29), 0  ;;  %p284_p1 = scmp.eq.s32.totalorder %s947_s28, 1 }
  0x24   : > { %1533 = sst [smem:[#allocation12_spill]] %s1546_s29  ;;  %p1362_p0 = por %p278_p12, %p277_p11 }
  0x25   : > { %s264_s12 = ssub.s32 %s1246_s25, %s1546_s29  ;;  %p958_p2 = scmp.ge.s32.totalorder %s1250_s26, 1 }
  0x26   : > { %p265_p3 = scmp.eq.s32.totalorder %s264_s12, 0  ;;  %p1369_p4 = por %p284_p1, %p283_p13 }
  0x27   : > { %p371_p5 = scmp.lt.s32.totalorder %s1250_s26, 3 }
  0x28   : > { %s1375_s14 = scalar_select %p265_p3, %s1238_s23, %s267_s30  }
  0x29   : > { %p372_p6 = pnand %p958_p2, %p371_p5 }
  0x2a   : > { %1536 = sst [smem:[#allocation13_spill]] %s1375_s14  ;;  %s1526_s15 = sand.u32 (!%p372_p6), 1, %s1234_s22  }
  0x2b   : > { %375 = sbr.rel (%p372_p6) target bundleno = 854 (0x356), region = 52  ;;  %p428_p7 = scmp.lt.s32.totalorder (!%p372_p6), %s1242_s24, 1 }
  0x2c   : > { %s1381_s16 = sshll.u32 (!%p372_p6), %s1526_s15, 3  ;;  %s432_s17 = sld [smem:[#allocation5 + %s1242_s24]] (!%p372_p6) }
  0x2d   : > { %s451_s19 = sld [smem:[#allocation5 + %s1242_s24]] (!%p372_p6) }
  0x2e   : > { %s438_s21 = sld [smem:[#allocation4 + %s1242_s24]] (!%p372_p6) }
  0x2f   : > { %s1537_s2 = sld [smem:[#allocation14_spill]] (!%p372_p6) }
  0x30   : > { %vm477_vm0 = vcmask 72704   ;;  %v1254_v0 = vmov 0.0   ;;  %s429_s18 = scalar_select %p428_p7, %s1242_s24, 1 }
  0x31   : > { %478 = vst.msk [vmem:[#allocation2] sm:$0xff] %vm477_vm0, %v1254_v0  ;;  %s479_s30 = sld [smem:[#allocation5 + %s1242_s24]] }
  0x32   : > { %s960_s20 = sshll.u32 %s429_s18, 3  ;;  %s961_s12 = sadd.s32 4294967295, %s432_s17 }
  0x33   : > { %p434_p8 = scmp.gt.s32.totalorder %s961_s12, 0  ;;  %s963_s15 = sadd.s32 4294967295, %s451_s19 }
  0x34   : > { %s457_s29 = sld [smem:[#allocation4 + %s1242_s24]]  ;;  %p453_p9 = scmp.gt.s32.totalorder %s963_s15, 0 }
  0x35   : > { %s1392_s28 = scalar_lea.vmem %s1537_s2, %s960_s20  ;;  %s1548_s12 = smov (!%p434_p8, %s961_s12), 0 }
  0x36   : > { %s1550_s12 = smov (%p434_p8, %s1548_s12), 0  ;;  %s1552_s15 = smov (!%p453_p9, %s963_s15), 0 }
  0x37   : > { %s439_s25 = sadd.s32 %s438_s21, %s1550_s12  ;;  %s1556_s15 = smov (%p453_p9, %s1552_s15), 0 }
  0x38   : > { %p440_p10 = scmp.lt.s32.totalorder %s439_s25, 0  ;;  %s427_s21 = scalar_lea.vmem [#allocation6], %s1381_s16 }
  0x39   : > { %p968_p12 = scmp.le.s32.totalorder %s479_s30, 0 }
  0x3a   : > { %s1554_s25 = smov (!%p440_p10, %s439_s25), 0  ;;  %s458_s27 = sadd.s32 %s457_s29, %s1556_s15 }
  0x3b   : > { %s442_s20 = scalar_lea.vmem %s1517_s3, %s1554_s25  ;;  %s965_s17 = sshll.u32 %s458_s27, 4 }
  0x3c   : > { %p460_p11 = scmp.lt.s32.totalorder %s965_s17, 15  ;;  %483 = sbr.rel (%p968_p12) target bundleno = 294 (0x126), region = 60 }
  0x3d   : > { %s969_s2 = sshll.u32 (!%p968_p12), %s1242_s24, 3 }
  0x3e   : > { %s1558_s17 = smov (!%p460_p11, %s965_s17), 15 }
  0x3f   : > { %s966_s19 = sshll.u32 %s1558_s17, 3 }
  0x40   : > { %s1405_s23 = scalar_lea.vmem %s1518_s4, %s966_s19 }
  0x41   : > { %v513_v1 = vld [vmem:[%s1405_s23 + $0x78] sm:$0xff]  ;;  %v1255_v2 = vmov 0.0   ;;  %v512_v3 = vld [vmem:[%s1405_s23 + $0x70] sm:$0xff]  ;;  %vm1256_vm1 = vmmov 0   ;;  %v511_v4 = vld [vmem:[%s1405_s23 + $0x68] sm:$0xff]  ;;  %v485_v12 = vlaneseq  ;;  %v487_v17 = vstv %s969_s2 }
  0x42   : > { %1026 = vmatprep.subr.mxu0 %v1255_v2  ;;  %1058 = vmatprep.mubr.msk.f32.mxu0 %vm1256_vm1, %v1255_v2  ;;  %v510_v5 = vld [vmem:[%s1405_s23 + $0x60] sm:$0xff]  ;;  %v509_v6 = vld [vmem:[%s1405_s23 + $0x58] sm:$0xff]  ;;  %v508_v7 = vld [vmem:[%s1405_s23 + $0x50] sm:$0xff]  ;;  %v1257_v23 = vmov 1.0  }
  0x43   : > { %1027 = vmatpush3.msra.mxu0 %v513_v1  ;;  %v507_v8 = vld [vmem:[%s1405_s23 + $0x48] sm:$0xff]  ;;  %v506_v9 = vld [vmem:[%s1405_s23 + $0x40] sm:$0xff]  ;;  %v505_v10 = vld [vmem:[%s1405_s23 + $0x38] sm:$0xff]  ;;  %v486_v15 = vshrl.u32 %v485_v12, 7 }
  0x44   : > { %1028 = vmatprep.subr.mxu0 %v1255_v2  ;;  %v504_v11 = vld [vmem:[%s1405_s23 + $0x30] sm:$0xff]  ;;  %v503_v13 = vld [vmem:[%s1405_s23 + $0x28] sm:$0xff]  ;;  %v502_v14 = vld [vmem:[%s1405_s23 + $0x20] sm:$0xff] }
  0x45   : > { %1029 = vmatpush3.msra.mxu0 %v512_v3  ;;  %v501_v16 = vld [vmem:[%s1405_s23 + $0x18] sm:$0xff]  ;;  %v500_v18 = vld [vmem:[%s1405_s23 + $0x10] sm:$0xff]  ;;  %v488_v19 = vadd.s32 %v487_v17, %v486_v15  ;;  %v499_v20 = vld [vmem:[%s1405_s23 + $0x8] sm:$0xff] }
  0x46   : > { %1030 = vmatprep.subr.mxu0 %v1255_v2  ;;  %v970_v21 = vld [vmem:[%s442_s20] ss:$0 sm:$0xff] }
  0x47   : > { %1031 = vmatpush3.msra.mxu0 %v511_v4  ;;  %v498_v22 = vld [vmem:[%s1405_s23] sm:$0xff]  ;;  %vm494_vm2 = vcmp.eq.s32.totalorder %v488_v19, %v970_v21 }
  0x48   : > { %1032 = vmatprep.subr.mxu0 %v1255_v2  ;;  %v497_v24 = vld [vmem:[#allocation2] sm:$0xff] }
  0x49   : > { %1033 = vmatpush3.msra.mxu0 %v510_v5 }
  0x4a   : > { %1034 = vmatprep.subr.mxu0 %v1255_v2 }
  0x4b   : > { %1035 = vmatpush3.msra.mxu0 %v509_v6 }
  0x4c   : > { %1036 = vmatprep.subr.mxu0 %v1255_v2 }
  0x4d   : > { %1037 = vmatpush3.msra.mxu0 %v508_v7 }
  0x4e   : > { %1038 = vmatprep.subr.mxu0 %v1255_v2 }
  0x4f   : > { %1039 = vmatpush3.msra.mxu0 %v507_v8 }
  0x50   : > { %1040 = vmatprep.subr.mxu0 %v1255_v2 }
  0x51   : > { %1041 = vmatpush3.msra.mxu0 %v506_v9 }
  0x52   : > { %1042 = vmatprep.subr.mxu0 %v1255_v2 }
  0x53   : > { %1043 = vmatpush3.msra.mxu0 %v505_v10 }
  0x54   : > { %1044 = vmatprep.subr.mxu0 %v1255_v2 }
  0x55   : > { %1045 = vmatpush3.msra.mxu0 %v504_v11 }
  0x56   : > { %1046 = vmatprep.subr.mxu0 %v1255_v2 }
  0x57   : > { %1047 = vmatpush3.msra.mxu0 %v503_v13 }
  0x58   : > { %1048 = vmatprep.subr.mxu0 %v1255_v2 }
  0x59   : > { %1049 = vmatpush3.msra.mxu0 %v502_v14 }
  0x5a   : > { %1050 = vmatprep.subr.mxu0 %v1255_v2 }
  0x5b   : > { %1051 = vmatpush3.msra.mxu0 %v501_v16 }
  0x5c   : > { %1052 = vmatprep.subr.mxu0 %v1255_v2 }
  0x5d   : > { %1053 = vmatpush3.msra.mxu0 %v500_v18 }
  0x5e   : > { %1054 = vmatprep.subr.mxu0 %v1255_v2 }
  0x5f   : > { %1055 = vmatpush3.msra.mxu0 %v499_v20 }
  0x60   : > { %1056 = vmatprep.subr.mxu0 %v1255_v2 }
  0x61   : > { %1057 = vmatpush3.msra.mxu0 %v498_v22 }
  0x62   : > { %1059 = vmatmul.mubr.msk.f32.vlgmr.msra.gmra.mxu0 %vm494_vm2, %v1257_v23 }
 0x122   : > { %v580_v25 = vpop.f32.mrf.mxu0 }
 0x123   : > { %v584_v26 = vadd.f32 %v580_v25, %v497_v24 }
 0x124   : > { %v1060_v27 = vpop.f32.mrf.mxu0 }
 0x125   : > { %586 = vst.msk [vmem:[#allocation2] sm:$0xff] %vm477_vm0, %v584_v26 }
 0x126 PF: > { %1061 = vmatprep.subr.mxu1 %v1254_v0  ;;  %1071 = vmatprep.subr.mxu0 %v1254_v0  ;;  %v1258_v29 = vmov 8   ;;  %v601_v31 = vld [vmem:[%s1520_s6] sm:$0xff]  ;;  %vm1259_vm3 = vmmov 0   ;;  %vm602_vm4 = vcmask 64512   ;;  %v761_v37 = vld [vmem:[%s1522_s8 + $0x18] sm:$0xff]  ;;  %v760_v38 = vld [vmem:[%s1522_s8 + $0x10] sm:$0xff] }
 0x127   : > { %1145 = vset.pattern.permute.xlu0 %v1258_v29  ;;  %1062 = vmatpush3.msra.mxu1 %v601_v31  ;;  %v600_v35 = vld [vmem:[%s1519_s5] sm:$0xff]  ;;  %v759_v39 = vld [vmem:[%s1522_s8 + $0x8] sm:$0xff]  ;;  %vm769_vm5 = vcmask 261120   ;;  %s979_s25 = sshll.u32 %s1242_s24, 7  ;;  %s858_s15 = sshll.u32 %s427_s21, 4  ;;  %s859_s15 = int_to_ptr.vmem [resolvable:$true] %s858_s15 }
 0x128   : > { %1063 = vmatprep.mubr.msk.f32.mxu1 %vm1259_vm3, %v1254_v0  ;;  %1066 = vmatprep.subr.mxu1 %v1254_v0  ;;  %v599_v36 = vld [vmem:[%s1392_s28] sm:$0xff]  ;;  %s1471_s18 = scalar_lea.hbm %s1524_s10, %s979_s25  ;;  %s1538_s0 = sand.u32 1, %s1234_s22  }
 0x129   : > { %1079 = vmatprep.mubr.msk.f32.mxu0 %vm1259_vm3, %v1254_v0  ;;  %1072 = vmatpush3.msra.mxu0 %v761_v37  ;;  %v758_v40 = vld [vmem:[%s1522_s8] sm:$0xff]  ;;  %s845_s20 = scalar_lea.sflag [#allocation7], %s1538_s0  ;;  %s1172_s27 = scalar_lea.vmem %s859_s15, 128 }
 0x12a   : > { %1073 = vmatprep.subr.mxu0 %v1254_v0  ;;  %v975_v44 = vld [vmem:[%s1521_s7] ss:$0 sm:$0xff]  ;;  %p1173_p13 = scmp.ne.s32.totalorder %s859_s15, %s1172_s27  ;;  %s1260_s24 = smov [#allocation6]  }
 0x12b   : > { %1074 = vmatpush3.msra.mxu0 %v760_v38  ;;  %v976_v49 = vld [vmem:[%s1523_s9] ss:$0 sm:$0xff]  ;;  %s1176_s17 = sshll.u32 %s1260_s24, 4  ;;  %s1177_s17 = int_to_ptr.vmem [resolvable:$false] %s1176_s17 }
 0x12c   : > { %v590_v28 = vld [vmem:[#allocation2] sm:$0xff]  ;;  %1075 = vmatprep.subr.mxu0 %v1254_v0  ;;  %p1174_p1 = pnand %p1173_p13, %p1362_p0  ;;  %s1178_s28 = scalar_lea.vmem %s1177_s17, 256 }
 0x12d   : > { %v591_v30 = vmax.f32 %v590_v28, 1.0  ;;  %1076 = vmatpush3.msra.mxu0 %v759_v39  ;;  %p1179_p3 = scmp.lt.s32.totalorder %s859_s15, %s1177_s17  ;;  %p1180_p5 = scmp.lt.s32.totalorder %s1178_s28, %s1172_s27 }
 0x12e   : > { %1077 = vmatprep.subr.mxu0 %v1254_v0  ;;  %p1175_p2 = pneg %p1174_p1 }
 0x12f   : > { %1146 = vrcp.f32 %v591_v30  ;;  %1078 = vmatpush3.msra.mxu0 %v758_v40  ;;  %p1181_p6 = por %p1180_p5, %p1179_p3 }
 0x131   : > { %p1182_p7 = pnand %p1181_p6, %p1175_p2 }
 0x13c   : > { %v1147_v32 = vpop.eup %1146 }
 0x13d   : > { %595 = vperm.xlu0 %1145, %v1147_v32  }
 0x1b8   : > { %v596_v33 = vpop.permute.xlu0 %595 }
 0x1b9   : > { %v598_v34 = vmul.f32 %v596_v33, %v590_v28 }
 0x1bb   : > { %1064 = vmatmul.mubr.msk.f32.vlgmr.msra.gmra.mxu1 %vm602_vm4, %v598_v34 }
 0x1bc   : > { %1067 = vmatpush3.msra.mxu1 %v600_v35  ;;  %1068 = vmatprep.mubr.msk.f32.mxu1 %vm1259_vm3, %v1254_v0 }
 0x1bf   : > { %1069 = vmatmul.mubr.msk.f32.vlgmr.msra.gmra.mxu1 %vm602_vm4, %v599_v36 }
 0x27b   : > { %v672_v41 = vpop.f32.mrf.mxu1 }
 0x27d   : > { %v1065_v42 = vpop.f32.mrf.mxu1 }
 0x27f   : > { %v745_v43 = vpop.f32.mrf.mxu1 }
 0x280   : > { %v746_v45 = vadd.f32 %v745_v43, %v672_v41 }
 0x281   : > { %v1070_v46 = vpop.f32.mrf.mxu1 }
 0x282   : > { %v756_v47 = vadd.f32 %v975_v44, %v746_v45 }
 0x284   : > { %v757_v48 = vmax.f32 %v756_v47, 0.0 }
 0x286   : > { %1080 = vmatmul.mubr.msk.f32.vlgmr.msra.gmra.mxu0 %vm769_vm5, %v757_v48 }
 0x346   : > { %v839_v50 = vpop.f32.mrf.mxu0 }
 0x347   : > { %v840_v51 = vadd.f32 %v976_v49, %v839_v50 }
 0x348   : > { %v1081_v52 = vpop.f32.mrf.mxu0 }
 0x349   : > { %843 = vst [vmem:[%s427_s21] sm:$0xff] %v840_v51 }
 0x34a   : > { %1185 = shalt.err (!%p1182_p7)
}
 0x34b   : > { %s1186_s16 = scalar_lea.hbm %s1471_s18, 128  ;;  %s1190_s2 = scalar_lea.hbm %s1524_s10, 256 }
 0x34c   : > { %p1187_p8 = scmp.ne.s32.totalorder %s1471_s18, %s1186_s16  ;;  %p1191_p11 = scmp.lt.s32.totalorder %s1471_s18, %s1524_s10 }
 0x34d   : > { %p1192_p12 = scmp.lt.s32.totalorder %s1190_s2, %s1186_s16 }
 0x34e   : > { %p1188_p9 = pnand %p1187_p8, %p1362_p0 }
 0x34f   : > { %p1193_p13 = por %p1192_p12, %p1191_p11 }
 0x350   : > { %p1189_p10 = pneg %p1188_p9 }
 0x352   : > { %p1194_p1 = pnand %p1193_p13, %p1189_p10 }
 0x354   : > { %1197 = shalt.err (!%p1194_p1)
}
 0x355   : > { %1082 = dma.vmem_to_hbm [thread:$0]  (%p1362_p0), %s859_s15, 128, %s1471_s18, %s845_s20  }
 0x356 PF: > { %p1088_p2 = scmp.ge.s32.totalorder %s1250_s26, 2  ;;  %s870_s23 = sand.u32 1, %s1230_s1  }
 0x357   : > { %s871_s25 = scalar_lea.sflag [#allocation7], %s870_s23 }
 0x358   : > { %p1085_p3 = pnand %p1088_p2, %p1369_p4 }
 0x35a   : > { %p1086_p5 = pneg %p1085_p3 }
 0x35c   : > { %1225 = dma.done.wait (%p1086_p5), %s871_s25, 128  }
 0x35d   : > { %1227 = vsyncadd (%p1086_p5), %s871_s25, 4294967168  ;;  %s33_s26 = sadd.s32 1, %s1250_s26   ;;  %s1539_s30 = sld [smem:[#allocation10_spill]] }
 0x35e   : > { %p30_p6 = scmp.ge.s32.totalorder %s33_s26, 4   ;;  %s1540_s23 = sld [smem:[#allocation13_spill]] }
 0x35f   : > { %s1541_s24 = sld [smem:[#allocation11_spill]]  ;;  %s1543_s1 = smov %s1234_s22 }
 0x360   : > { %s1542_s25 = sld [smem:[#allocation12_spill]]  ;;  %32 = sbr.rel (!%p30_p6) target bundleno = 30 (0x1e), region = 105 }
 0x363   : > { %s1544_s22 = smov %s1539_s30 }
 0x365   :  { %876 = vsyncpa [#allocation7], 1 }
 0x366   :  { %878 = vsyncpa [#allocation7 + $0x1], 1 }

</bundles_post_ra>
